<compile_context>
chip_gen: v7x
topology: tpu7x:2x2x1
jax: 0.10.0
libtpu: 0.0.40
codegen_flags: <defaults>
</compile_context>

<pallas_src>
import functools
import math
import numpy as np
import jax
import jax.numpy as jnp
from jax.experimental import pallas as pl
from jax.experimental.pallas import tpu as pltpu


# ----------------------------------------------------------------------------
# Glue: group-transformation indices + filter transform (plain JAX / numpy)
# ----------------------------------------------------------------------------
def make_c4_z2_indices(ksize):
    """Indices that realize the 4 rotations of a Z2 filter (GrouPy c4_z2)."""
    assert ksize % 2 == 1, "odd kernel size only"
    # TODO(synk): even ksize uses C4_halfshift in GrouPy; not implemented here.
    c = ksize // 2
    inds = np.zeros((4, 1, ksize, ksize, 3), dtype=np.int32)
    for r in range(4):
        cos = int(round(math.cos(r * math.pi / 2)))
        sin = int(round(math.sin(r * math.pi / 2)))
        for i in range(ksize):
            for j in range(ksize):
                u, v = i - c, j - c
                up = cos * u + sin * v        # R(-r) applied to (u, v)
                vp = -sin * u + cos * v
                inds[r, 0, i, j] = (0, up + c, vp + c)
    return inds


def trans_filter(w, inds):
    """JAX equivalent of GrouPy trans_filter.

    w:    (O, I, S_in, k, k)
    inds: (S_out, S_in, k, k, 3)
    returns (O, S_out, I, S_in, k, k)
    """
    flat = inds.reshape(-1, 3)
    w_indexed = w[:, :, flat[:, 0], flat[:, 1], flat[:, 2]]
    w_indexed = w_indexed.reshape(w.shape[0], w.shape[1], *inds.shape[:4])
    return jnp.transpose(w_indexed, (0, 2, 1, 3, 4, 5))


# ----------------------------------------------------------------------------
# Pallas kernel: fused (transposed) GEMM + bias, final output layout in-kernel
# ----------------------------------------------------------------------------
def _gconv_gemm_kernel(p_ref, w_ref, b_ref, o_ref):
    # p_ref: (1, K, TILE_M)    bf16  im2col patches, spatial (lane-dense) on lanes
    # w_ref: (Cout, K)         bf16  transformed filters (grid-invariant)
    # b_ref: (Cout, 1)         f32   stabilizer-expanded bias (grid-invariant)
    # o_ref: (1, Cout, TILE_M) f32   output tile, already in final layout
    acc = jnp.dot(w_ref[...], p_ref[0],
                  preferred_element_type=jnp.float32)       # (Cout, TILE_M)
    o_ref[0] = (acc + b_ref[...]).astype(o_ref.dtype)


def _round_up(v, m):
    return (v + m - 1) // m * m


def _pick_tile_m(m_pad):
    """m_pad is a multiple of 128.  Prefer >= 2 grid steps along M (pipelining
    and megacore headroom) with lane width in the 128..512 range (256-multiples
    feed the full 256-wide v6e/v7x MXU)."""
    for cand in (512, 256, 128):
        if m_pad % cand == 0 and m_pad // cand >= 2:
            return cand
    return m_pad          # m_pad == 128: single lane-dense tile


def split_gconv2d_forward(x, weight, bias, *, out_channels, in_channels,
                          kernel_size, stride=1, padding=0,
                          input_stabilizer_size=1, output_stabilizer_size=4):
    """Forward pass of SplitGConv2D (inds_transformer='c4_z2').

    x:      (N, in_channels * input_stabilizer_size, H, W)   float32 (NCHW)
    weight: (out_channels, in_channels, input_stabilizer_size, k, k)
    bias:   (out_channels,) or None
    returns (N, out_channels, output_stabilizer_size, H_out, W_out)
    """
    k = kernel_size
    sh = sw = stride
    ph = pw = padding

    Cout = out_channels * output_stabilizer_size
    Cin = in_channels * input_stabilizer_size
    K = k * k * Cin

    # --- filter transform (glue) -> (Cout, K) bf16, K ordered ((kh, kw), ci) ---
    inds = make_c4_z2_indices(k)
    tw = trans_filter(weight, inds)                     # (O, 4, I, 1, k, k)
    tw = tw.reshape(Cout, Cin, k, k)                    # OIHW
    w2d = jnp.transpose(tw, (0, 2, 3, 1)).reshape(Cout, K).astype(jnp.bfloat16)

    if bias is None:
        bias_full = jnp.zeros((Cout,), jnp.float32)
    else:
        bias_full = jnp.repeat(bias.astype(jnp.float32), output_stabilizer_size)
    bias2d = bias_full.reshape(Cout, 1)

    # --- wrapper-side im2col: (N, K, M_pad) with the spatial axis on lanes ---
    N, _, H, W = x.shape
    x = x.reshape(N, Cin, H, W)
    if ph or pw:
        x = jnp.pad(x, ((0, 0), (0, 0), (ph, ph), (pw, pw)))
    H_p, W_p = H + 2 * ph, W + 2 * pw
    H_out = (H_p - k) // sh + 1
    W_out = (W_p - k) // sw + 1
    M = H_out * W_out
    M_pad = _round_up(M, 128)

    taps = []
    for kh in range(k):
        for kw in range(k):
            taps.append(jax.lax.slice(
                x, (0, 0, kh, kw),
                (N, Cin, kh + (H_out - 1) * sh + 1, kw + (W_out - 1) * sw + 1),
                (1, 1, sh, sw)))                         # (N, Cin, H_out, W_out)
    patches = jnp.stack(taps, axis=1)                    # (N, k*k, Cin, H_out, W_out)
    patches = patches.reshape(N, K, M).astype(jnp.bfloat16)
    if M_pad != M:
        patches = jnp.pad(patches, ((0, 0), (0, 0), (0, M_pad - M)))
    # TODO(synk): the patch slab is k*k times the input bytes in HBM; for very
    # large images a halo-tiled in-kernel im2col would cut that traffic.

    TILE_M = _pick_tile_m(M_pad)
    n_m_tiles = M_pad // TILE_M

    # --- explicit VMEM budget (v5e 16 MiB default scoped / v7x 64 MiB phys) ---
    block_bytes = (2 * _round_up(K, 16) * TILE_M * 2                     # patches
                   + 2 * _round_up(Cout, 16) * _round_up(K, 128) * 2     # weights
                   + 2 * _round_up(Cout, 8) * 128 * 4                    # bias
                   + 2 * _round_up(Cout, 8) * TILE_M * 4)                # output
    vmem_limit = int(min(100 * 2 ** 20, max(8 * 2 ** 20, 4 * block_bytes)))
    # TODO(synk): for deep layers (large Cin*k*k and Cout) add a K-tiling grid
    # axis ("arbitrary") with an f32 VMEM accumulator so resident weights stay
    # bounded on v7x's 64 MiB VMEM.

    cost = pl.CostEstimate(
        flops=2 * N * M_pad * Cout * K,
        transcendentals=0,
        bytes_accessed=(N * K * M_pad * 2 + Cout * K * 2 + Cout * 4
                        + N * Cout * M_pad * 4))

    # Batch is the megacore-sharded axis when N >= 2 so the two v7x
    # TensorCores get disjoint working sets; otherwise shard the M axis.
    dim_sem = ("parallel", "arbitrary") if N > 1 else ("arbitrary", "parallel")

    y = pl.pallas_call(
        _gconv_gemm_kernel,
        out_shape=jax.ShapeDtypeStruct((N, Cout, M_pad), jnp.float32),
        grid=(N, n_m_tiles),
        in_specs=[
            pl.BlockSpec((1, K, TILE_M), lambda n, m: (n, 0, m)),
            pl.BlockSpec((Cout, K), lambda n, m: (0, 0)),     # grid-invariant
            pl.BlockSpec((Cout, 1), lambda n, m: (0, 0)),     # grid-invariant
        ],
        out_specs=pl.BlockSpec((1, Cout, TILE_M), lambda n, m: (n, 0, m)),
        compiler_params=pltpu.CompilerParams(
            dimension_semantics=dim_sem,
            vmem_limit_bytes=vmem_limit),
        cost_estimate=cost,
    )(patches, w2d, bias2d)

    # --- epilogue: pure reshapes (layout is already (N, Cout, H_out*W_out)) ---
    if M_pad != M:
        y = y[:, :, :M]
    return y.reshape(N, out_channels, output_stabilizer_size, H_out, W_out)


# ----------------------------------------------------------------------------
# Pure-JAX reference (matches the kernel's bf16-operand / f32-accum math)
# ----------------------------------------------------------------------------
def _reference_forward(x, weight, bias, **kw):
    k = kw["kernel_size"]
    Cout = kw["out_channels"] * kw["output_stabilizer_size"]
    Cin = kw["in_channels"] * kw["input_stabilizer_size"]
    tw = trans_filter(weight, make_c4_z2_indices(k)).reshape(Cout, Cin, k, k)
    xq = x.astype(jnp.bfloat16).astype(jnp.float32)
    twq = tw.astype(jnp.bfloat16).astype(jnp.float32)
    y = jax.lax.conv_general_dilated(
        xq, twq,
        window_strides=(kw["stride"], kw["stride"]),
        padding=[(kw["padding"], kw["padding"])] * 2,
        dimension_numbers=("NCHW", "OIHW", "NCHW"),
        precision=jax.lax.Precision.HIGHEST,
    )
    N, _, Ho, Wo = y.shape
    y = y.reshape(N, kw["out_channels"], kw["output_stabilizer_size"], Ho, Wo)
    if bias is not None:
        y = y + bias.reshape(1, kw["out_channels"], 1, 1, 1)
    return y


# ----------------------------------------------------------------------------
if __name__ == "__main__":
    # Module config (P4ConvZ2-like): c4_z2, input_stab=1, output_stab=4
    cfg = dict(in_channels=4, out_channels=8, kernel_size=3, stride=1,
               padding=1, input_stabilizer_size=1, output_stabilizer_size=4)
    N, H, W = 2, 16, 16

    key = jax.random.PRNGKey(0)
    kx, kw_, kb = jax.random.split(key, 3)

    # Deterministic parameter init matching reset_parameters():
    # uniform(-stdv, stdv), stdv = 1/sqrt(in_channels * k * k)
    stdv = 1.0 / math.sqrt(cfg["in_channels"] * cfg["kernel_size"] ** 2)
    weight = jax.random.uniform(
        kw_,
        (cfg["out_channels"], cfg["in_channels"], cfg["input_stabilizer_size"],
         cfg["kernel_size"], cfg["kernel_size"]),
        minval=-stdv, maxval=stdv, dtype=jnp.float32)
    bias = jax.random.uniform(kb, (cfg["out_channels"],),
                              minval=-stdv, maxval=stdv, dtype=jnp.float32)

    x = jax.random.normal(
        kx, (N, cfg["in_channels"] * cfg["input_stabilizer_size"], H, W),
        dtype=jnp.float32)

    fwd = jax.jit(functools.partial(split_gconv2d_forward, **cfg))
    y = fwd(x, weight, bias)
    y = jax.block_until_ready(y)

    y_ref = _reference_forward(x, weight, bias, **cfg)
    assert y.shape == (N, cfg["out_channels"], cfg["output_stabilizer_size"], H, W)
    np.testing.assert_allclose(np.asarray(y), np.asarray(y_ref),
                               rtol=2e-3, atol=2e-3)
    print("KERNEL_OK")
</pallas_src>

<mosaic_0001>
module attributes {stable_mosaic.version = 11 : i64} {
  func.func @_gconv_gemm_kernel(%arg0: i32, %arg1: i32, %arg2: memref<1x36x128xbf16, #tpu.memory_space<vmem>>, %arg3: memref<32x36xbf16, #tpu.memory_space<vmem>>, %arg4: memref<32x1xf32, #tpu.memory_space<vmem>>, %arg5: memref<1x32x128xf32, #tpu.memory_space<vmem>>) attributes {dimension_semantics = [#tpu.dimension_semantics<parallel>, #tpu.dimension_semantics<arbitrary>], iteration_bounds = array<i64: 2, 2>, scalar_prefetch = 0 : i64, scratch_operands = 0 : i64, tpu.core_type = #tpu.core_type<tc>, window_params = [{transform_indices = @transform_0, window_bounds = array<i64: 1, 36, 128>}, {pipeline_mode = #tpu.pipeline_mode<synchronous>, transform_indices = @transform_1, window_bounds = array<i64: 32, 36>}, {pipeline_mode = #tpu.pipeline_mode<synchronous>, transform_indices = @transform_2, window_bounds = array<i64: 32, 1>}, {transform_indices = @transform_3, window_bounds = array<i64: 1, 32, 128>}]} {
    %c0 = arith.constant 0 : index
    %c0_0 = arith.constant 0 : index
    %0 = vector.load %arg3[%c0, %c0_0] : memref<32x36xbf16, #tpu.memory_space<vmem>>, vector<32x36xbf16>
    %c0_1 = arith.constant 0 : index
    %c0_2 = arith.constant 0 : index
    %c0_3 = arith.constant 0 : index
    %1 = vector.load %arg2[%c0_1, %c0_2, %c0_3] : memref<1x36x128xbf16, #tpu.memory_space<vmem>>, vector<1x36x128xbf16>
    %2 = vector.shape_cast %1 : vector<1x36x128xbf16> to vector<36x128xbf16>
    %cst = arith.constant dense<0.000000e+00> : vector<32x128xf32>
    %3 = tpu.matmul %0, %2, %cst {dimension_numbers = #tpu.dot_dimension_numbers<[1], [0], [0], [1], [0, 0, 1, 1], [], []>} : vector<32x36xbf16>, vector<36x128xbf16>, vector<32x128xf32> -> vector<32x128xf32>
    %c0_4 = arith.constant 0 : index
    %c0_5 = arith.constant 0 : index
    %4 = vector.load %arg4[%c0_4, %c0_5] : memref<32x1xf32, #tpu.memory_space<vmem>>, vector<32x1xf32>
    %5 = vector.broadcast %4 : vector<32x1xf32> to vector<32x128xf32>
    %6 = arith.addf %3, %5 : vector<32x128xf32>
    %c0_6 = arith.constant 0 : index
    %c0_7 = arith.constant 0 : index
    %c0_8 = arith.constant 0 : index
    %7 = vector.load %arg5[%c0_6, %c0_7, %c0_8] : memref<1x32x128xf32, #tpu.memory_space<vmem>>, vector<1x32x128xf32>
    %8 = vector.shape_cast %7 : vector<1x32x128xf32> to vector<32x128xf32>
    %9 = vector.shape_cast %6 : vector<32x128xf32> to vector<1x32x128xf32>
    tpu.vector_store %arg5[%c0_6, %c0_7, %c0_8], %9 {strides = array<i32>} : memref<1x32x128xf32, #tpu.memory_space<vmem>>, vector<1x32x128xf32>,
    return
  }
  func.func @transform_0(%arg0: i32, %arg1: i32) -> (i32, i32, i32) {
    %c0_i32 = arith.constant 0 : i32
    %c0_i32_0 = arith.constant 0 : i32
    return %arg0, %c0_i32, %arg1 : i32, i32, i32
  }
  func.func @transform_1(%arg0: i32, %arg1: i32) -> (i32, i32) {
    %c0_i32 = arith.constant 0 : i32
    %c0_i32_0 = arith.constant 0 : i32
    %c0_i32_1 = arith.constant 0 : i32
    return %c0_i32, %c0_i32_0 : i32, i32
  }
  func.func @transform_2(%arg0: i32, %arg1: i32) -> (i32, i32) {
    %c0_i32 = arith.constant 0 : i32
    %c0_i32_0 = arith.constant 0 : i32
    %c0_i32_1 = arith.constant 0 : i32
    return %c0_i32, %c0_i32_0 : i32, i32
  }
  func.func @transform_3(%arg0: i32, %arg1: i32) -> (i32, i32, i32) {
    %c0_i32 = arith.constant 0 : i32
    %c0_i32_0 = arith.constant 0 : i32
    return %arg0, %c0_i32, %arg1 : i32, i32, i32
  }
}

</mosaic_0001>

<bundles_post_ra>
// kernel: split_gconv2d_forward.1
= control target key start
LH: loop header
LB: loop body
LE: loop exit
PB: predicated region body
PF: predicated region fallthrough
CT: control target
= control target key end

     0   :  { %s669_s12 = smov 0   ;;  %s671_s13 = smov 0   ;;  %s789_s0 = inlined_call_operand.vmem [shape: bf16[2,36,256], index: 0, kind: input, shape index: {}]   ;;  %s790_s1 = inlined_call_operand.vmem [shape: bf16[32,36], index: 1, kind: input, shape index: {}]   ;;  %s791_s2 = inlined_call_operand.vmem [shape: f32[32,1], index: 2, kind: input, shape index: {}]   ;;  %s792_s3 = inlined_call_operand.vmem [shape: f32[2,32,256], index: 3, kind: output, shape index: {}]  }
   0x1   :  { %s673_s14 = smov 0   ;;  %s675_s15 = smov 0  }
   0x2   :  { %s677_s16 = smov 0   ;;  %s679_s17 = smov 0  }
   0x3   :  { %s681_s18 = smov 0  }
   0x4 LB: > { %s22_s19 = sadd.s32 1, %s638_s16  ;;  %s25_s20 = sadd.s32 1, %s642_s17  ;;  %s646_s18 = sphi %s681_s18, %s13_s18   ;;  %s642_s17 = sphi %s679_s17, %s799_s17   ;;  %s638_s16 = sphi %s677_s16, %s798_s16   ;;  %s634_s15 = sphi %s675_s15, %s797_s15   ;;  %s630_s14 = sphi %s673_s14, %s796_s14   ;;  %s626_s13 = sphi %s671_s13, %s795_s13   ;;  %s622_s12 = sphi %s669_s12, %s794_s12  }
   0x5   : > { %p23_p0 = scmp.ge.s32.totalorder %s22_s19, 2  ;;  %s490_s21 = sadd.s32 4294967295, %s646_s18  }
   0x6   : > { %p41_p1 = scmp.ne.s32.totalorder %s626_s13, %s622_s12  ;;  %p42_p2 = scmp.eq.s32.totalorder %s646_s18, 0 }
   0x7   : > { %s801_s19 = smov (%p23_p0, %s22_s19), 0  ;;  %s803_s20 = smov (!%p23_p0, %s25_s20), %s642_s17 }
   0x8   : > { %p27_p3 = scmp.ge.s32.totalorder %s803_s20, 2  ;;  %p115_p4 = scmp.eq.s32.totalorder %s490_s21, 3 }
   0x9   : > { %s30_s22 = ssub.s32 %s638_s16, %s801_s19  ;;  %p43_p5 = por %p42_p2, %p41_p1 }
   0xa   : > { %s805_s20 = smov (%p27_p3, %s803_s20), 0  ;;  %p717_p6 = por %p115_p4, %p41_p1 }
   0xb   : > { %s29_s24 = ssub.s32 %s642_s17, %s805_s20  ;;  %s34_s26 = sadd.s32 1, %s626_s13 }
   0xc   : > { %s31_s25 = sor.u32 %s30_s22, %s29_s24  ;;  %p493_p8 = scmp.ge.s32.totalorder %s646_s18, 4 }
   0xd   : > { %p32_p7 = scmp.eq.s32.totalorder %s31_s25, 0 }
   0xe   : > { %143 = sbr.rel (%p493_p8) target bundleno = 31 (0x1f), region = 24 }
   0xf   : > { %s725_s27 = scalar_select %p32_p7, %s626_s13, %s34_s26  }
  0x15   : > { %146 = sbr.rel (!%p43_p5) target bundleno = 31 (0x1f), region = 28  ;;  %s148_s28 = sand.u32 (%p43_p5), 1, %s626_s13  }
  0x16   : > { %s526_s29 = smul.u32 (%p43_p5), 10, %s642_s17 }
  0x17   : > { %s525_s30 = smul.u32 (%p43_p5), 20, %s148_s28 }
  0x18   : > { %s152_s4 = sadd.s32 (%p43_p5), %s638_s16, %s526_s29 }
  0x19   : > { %s494_s5 = sshll.u32 (%p43_p5), %s152_s4, 2  ;;  %s150_s9 = scalar_lea.vmem (%p43_p5), [#allocation2], %s525_s30 }
  0x1a   : > { %s154_s8 = scalar_lea.vmem (%p43_p5), %s789_s0, %s494_s5 }
  0x1b   : > { %v170_v0 = vld [vmem:[%s154_s8] sm:$0xf] (%p43_p5)  ;;  %v172_v1 = vld [vmem:[%s154_s8 + $0x8] sm:$0xf] (%p43_p5)  ;;  %v174_v2 = vld [vmem:[%s154_s8 + $0x10] sm:$0xf] (%p43_p5) }
  0x1c   : > { %171 = vst [vmem:[%s150_s9] sm:$0xf] %v170_v0  ;;  %173 = vst [vmem:[%s150_s9 + $0x4] sm:$0xf] %v172_v1  ;;  %v176_v3 = vld [vmem:[%s154_s8 + $0x18] sm:$0xf] }
  0x1d   : > { %175 = vst [vmem:[%s150_s9 + $0x8] sm:$0xf] %v174_v2  ;;  %v178_v4 = vld [vmem:[%s154_s8 + $0x20] sm:$0xf]  ;;  %177 = vst [vmem:[%s150_s9 + $0xc] sm:$0xf] %v176_v3 }
  0x1e   : > { %179 = vst [vmem:[%s150_s9 + $0x10] sm:$0xf] %v178_v4 }
  0x1f PF: > { %p495_p9 = scmp.ge.s32.totalorder %s646_s18, 1  ;;  %p211_p10 = scmp.lt.s32.totalorder %s646_s18, 5 }
  0x21   : > { %p212_p11 = pnand %p495_p9, %p211_p10 }
  0x22   : > { %s218_s10 = sand.u32 (!%p212_p11), 1, %s622_s12   ;;  %v590_v5 = vld [vmem:[%s790_s1] sm:$0xff] (!%p212_p11)   ;;  %vm299_vm0 = vcmask (!%p212_p11), 293888   ;;  %v252_v6 = vld [vmem:[%s791_s2 + $0x10] sm:$0xff] (!%p212_p11)  ;;  %v648_v8 = vmov (!%p212_p11), 0   ;;  %v253_v9 = vld [vmem:[%s791_s2 + $0x18] sm:$0xff] (!%p212_p11) }
  0x23   : > { %215 = sbr.rel (%p212_p11) target bundleno = 278 (0x116), region = 69  ;;  %v250_v7 = vld [vmem:[%s791_s2] sm:$0xff] (!%p212_p11)  ;;  %520 = vmatprep.mubr.msk.bf16.mxu0 (!%p212_p11), %vm299_vm0, %v590_v5  ;;  %586 = vset.pattern.permute.xlu1 (!%p212_p11), %v648_v8  ;;  %v251_v12 = vld [vmem:[%s791_s2 + $0x8] sm:$0xff] (!%p212_p11)  ;;  %vm306_vm1 = vcmask (!%p212_p11), 1041408   ;;  %s496_s9 = sshll.u32 (!%p212_p11), %s218_s10, 5 }
  0x24   : > { %s527_s11 = smul.u32 (!%p212_p11), 20, %s218_s10  ;;  %585 = vset.pattern.permute.xlu0 (!%p212_p11), %v648_v8  ;;  %266 = vperm.xlu1 (!%p212_p11), %586, %v252_v6   ;;  %v591_v15 = vld [vmem:[%s790_s1 + $0x8] sm:$0xff] (!%p212_p11)  }
  0x25   : > { %256 = vperm.xlu0 (!%p212_p11), %585, %v250_v7  }
  0x26   : > { %s220_s4 = scalar_lea.vmem (!%p212_p11), [#allocation2], %s527_s11  ;;  %s239_s11 = scalar_lea.vmem (!%p212_p11), [#allocation3], %s496_s9 }
  0x27   : > { %v587_v10 = vld [vmem:[%s220_s4] sm:$0xff] (!%p212_p11)   ;;  %v588_v11 = vld [vmem:[%s220_s4 + $0x8] sm:$0xff] (!%p212_p11)   ;;  %v589_v13 = vld [vmem:[%s220_s4 + $0x10] ss:$0 sps:$4 sm:$0x33] (!%p212_p11)  }
  0x28   : > { %514 = vmatprep.subr.bf16.mxu0 (!%p212_p11), %v587_v10  ;;  %271 = vperm.xlu1 (!%p212_p11), %586, %v253_v9   ;;  %v308_v14 = vsel (!%p212_p11), %vm306_vm1, %v589_v13, 0 }
  0x29   : > { %515 = vmatpush3.bf16.msra.mxu0 (!%p212_p11), %v587_v10  ;;  %261 = vperm.xlu0 (!%p212_p11), %585, %v251_v12  }
  0x2a   : > { %516 = vmatprep.subr.bf16.mxu0 %v588_v11  ;;  %s505_s12 = sshll.u32 (%p717_p6), %s634_s15, 3 }
  0x2b   : > { %s371_s10 = sadd.s32 (%p717_p6), %s630_s14, %s505_s12 }
  0x2c   : > { %s506_s21 = sshll.u32 (%p717_p6), %s371_s10, 3 }
  0x2d   : > { %517 = vmatpush3.bf16.msra.mxu0 %v588_v11  ;;  %s373_s25 = scalar_lea.vmem (%p717_p6), %s792_s3, %s506_s21 }
  0x2e   : > { %524 = vmatprep.subr.msk.bf16.mxu0 %vm306_vm1, %v589_v13 }
  0x31   : > { %519 = vmatpush3.bf16.msra.mxu0 %v308_v14 }
  0x34   : > { %521 = vmatmul.mubr.msk.bf16.vlgmr.msra.gmra.mrb[0].mxu0 %vm299_vm0, %v591_v15 }
  0xa3   : > { %v267_v16 = vpop.permute.xlu1 %266 }
  0xa4   : > { %v257_v17 = vpop.permute.xlu0 %256 }
  0xa7   : > { %v272_v21 = vpop.permute.xlu1 %271 }
  0xa8   : > { %v262_v24 = vpop.permute.xlu0 %261 }
 0x107   : > { %v522_v18 = vpop.f32.mrb[0].mxu0  ;;  %369 = sbr.rel (!%p717_p6) target bundleno = 278 (0x116), region = 77 }
 0x108   : > { %v353_v19 = vadd.f32 %v522_v18, %v267_v16  ;;  %v344_v20 = vpop.f32.mrb[1].mxu0 }
 0x109   : > { %v345_v22 = vadd.f32 %v344_v20, %v257_v17  ;;  %v523_v23 = vpop.f32.mrb[2].mxu0 }
 0x10a   : > { %361 = vst [vmem:[%s239_s11 + $0x10] sm:$0xff] %v353_v19  ;;  %v356_v25 = vadd.f32 %v523_v23, %v272_v21  ;;  %v347_v26 = vpop.f32.mrb[3].mxu0 }
 0x10b   : > { %359 = vst [vmem:[%s239_s11] sm:$0xff] %v345_v22  ;;  %v348_v27 = vadd.f32 %v347_v26, %v262_v24 }
 0x10c   : > { %362 = vst [vmem:[%s239_s11 + $0x18] sm:$0xff] %v356_v25 }
 0x10d   : > { %360 = vst [vmem:[%s239_s11 + $0x8] sm:$0xff] %v348_v27 }
 0x111   : > { %v411_v30 = vld [vmem:[%s239_s11 + $0x10] sm:$0xff] }
 0x112   : > { %v407_v28 = vld [vmem:[%s239_s11] sm:$0xff]  ;;  %412 = vst [vmem:[%s373_s25 + $0x20] sm:$0xff] %v411_v30 }
 0x113   : > { %v413_v31 = vld [vmem:[%s239_s11 + $0x18] sm:$0xff]  ;;  %408 = vst [vmem:[%s373_s25] sm:$0xff] %v407_v28 }
 0x114   : > { %v409_v29 = vld [vmem:[%s239_s11 + $0x8] sm:$0xff]  ;;  %414 = vst [vmem:[%s373_s25 + $0x30] sm:$0xff] %v413_v31 }
 0x115   : > { %410 = vst [vmem:[%s373_s25 + $0x10] sm:$0xff] %v409_v29 }
 0x116 PF: > { %s13_s18 = sadd.s32 1, %s646_s18   ;;  %s794_s12 = smov %s626_s13 }
 0x117   : > { %p10_p12 = scmp.ge.s32.totalorder %s13_s18, 6   ;;  %s795_s13 = smov %s725_s27 }
 0x118   : > { %s796_s14 = smov %s638_s16  ;;  %s797_s15 = smov %s642_s17 }
 0x119   : > { %s798_s16 = smov %s801_s19  ;;  %s799_s17 = smov %s805_s20 }
 0x11a   :  { %12 = sbr.rel (!%p10_p12) target bundleno = 4 (0x4), region = 146 }

</bundles_post_ra>
